<compile_context>
chip_gen: v7x
topology: tpu7x:2x2x1
jax: 0.10.0
libtpu: 0.0.40
codegen_flags: <defaults>
</compile_context>

<pallas_src>
import functools

import jax
import jax.numpy as jnp
import numpy as np
from jax.experimental import pallas as pl
from jax.experimental.pallas import tpu as pltpu


# Matches torch.finfo(torch.float32).max used by masked_fill_ in the module.
_MASK_VALUE = -3.4028235e38
_STAT_LANES = 128   # lane-replicated width for m/l running statistics


def _pick_tile(n, target):
    """Largest multiple-of-128 tile <= target that divides n; else full extent."""
    if n <= target:
        return n
    t = target
    while t >= 128:
        if n % t == 0:
            return t
        t -= 128
    return n   # full-extent block (always legal, grid size 1 on that axis)


def _rep_minor(stat, width):
    """Broadcast a lane-replicated (rows, 128) statistic to (rows, width)."""
    lanes = stat.shape[-1]
    if width == lanes:
        return stat
    if width % lanes == 0:
        return jnp.tile(stat, (1, width // lanes))
    return jnp.broadcast_to(stat[:, :1], (stat.shape[0], width))


# ------------------- kernel 1: fused QKV projection (+scale) -------------------
def qkv_proj_kernel(x_ref, w_ref, q_ref, k_ref, v_ref, *, scale, dim_inner):
    x = x_ref[...]                                               # (tm, dim_in) f32
    qkv = jnp.dot(x, w_ref[...], preferred_element_type=jnp.float32)  # (tm, 3*di)
    # Fold the softmax scale into q once here (removes a per-KV-step VPU mul).
    q_ref[...] = (qkv[:, :dim_inner] * scale).astype(q_ref.dtype)
    k_ref[...] = qkv[:, dim_inner:2 * dim_inner].astype(k_ref.dtype)
    v_ref[...] = qkv[:, 2 * dim_inner:].astype(v_ref.dtype)


def qkv_projection(x, w_qkv, *, scale, tm, out_dtype=jnp.bfloat16):
    n, dim_in = x.shape
    three_di = w_qkv.shape[1]
    dim_inner = three_di // 3
    kernel = functools.partial(qkv_proj_kernel, scale=scale, dim_inner=dim_inner)
    out_spec = pl.BlockSpec((tm, dim_inner), lambda i: (i, 0))
    return pl.pallas_call(
        kernel,
        out_shape=tuple(jax.ShapeDtypeStruct((n, dim_inner), out_dtype)
                        for _ in range(3)),
        grid_spec=pltpu.PrefetchScalarGridSpec(
            num_scalar_prefetch=0,
            grid=(n // tm,),
            in_specs=[pl.BlockSpec((tm, dim_in), lambda i: (i, 0)),
                      pl.BlockSpec((dim_in, three_di), lambda i: (0, 0))],
            out_specs=[out_spec, out_spec, out_spec]),
        compiler_params=pltpu.CompilerParams(
            dimension_semantics=("parallel",)),
    )(x, w_qkv)


# ---------------- kernel 2: flash attention + fused output proj ----------------
def attn_kernel(q_ref, k_ref, v_ref, wo_ref, bo_ref, o_ref,
                m_scr, l_scr, acc_scr, *, causal):
    qi = pl.program_id(0)
    ki = pl.program_id(1)
    tq, d = q_ref.shape
    tkv = k_ref.shape[0]

    @pl.when(ki == 0)
    def _():
        m_scr[...] = jnp.full(m_scr.shape, -jnp.inf, jnp.float32)
        l_scr[...] = jnp.zeros(l_scr.shape, jnp.float32)
        acc_scr[...] = jnp.zeros(acc_scr.shape, jnp.float32)

    def step(apply_mask):
        q = q_ref[...]                                           # (tq, d)  bf16
        k = k_ref[...]                                           # (tkv, d) bf16
        # scores: (tq, tkv); contraction over feature axis (scale already in q)
        s = jax.lax.dot_general(q, k, (((1,), (1,)), ((), ())),
                                preferred_element_type=jnp.float32)
        if apply_mask:
            row = qi * tq + jax.lax.broadcasted_iota(jnp.int32, (tq, tkv), 0)
            col = ki * tkv + jax.lax.broadcasted_iota(jnp.int32, (tq, tkv), 1)
            s = jnp.where(col > row, _MASK_VALUE, s)

        # online-softmax update (m/l lane-replicated across _STAT_LANES)
        m_prev = m_scr[...]                                      # (tq, 128)
        m_next = jnp.maximum(m_prev, jnp.max(s, axis=-1, keepdims=True))
        alpha = jnp.exp(m_prev - m_next)                         # EUP
        p = jnp.exp(s - _rep_minor(m_next, tkv))                 # EUP
        l_scr[...] = alpha * l_scr[...] + jnp.sum(p, axis=-1, keepdims=True)
        acc_scr[...] = (_rep_minor(alpha, d) * acc_scr[...]
                        + jnp.dot(p.astype(v_ref.dtype), v_ref[...],
                                  preferred_element_type=jnp.float32))
        m_scr[...] = m_next

    if causal:
        q_first = qi * tq
        q_last = qi * tq + (tq - 1)
        k_first = ki * tkv
        k_last = ki * tkv + (tkv - 1)
        fully_visible = k_last <= q_first                        # no masked entries
        straddles = jnp.logical_and(k_first <= q_last, k_last > q_first)
        # Tiles entirely above the diagonal (k_first > q_last) are skipped.

        @pl.when(fully_visible)
        def _():
            step(apply_mask=False)

        @pl.when(straddles)
        def _():
            step(apply_mask=True)
    else:
        step(apply_mask=False)

    @pl.when(ki == pl.num_programs(1) - 1)
    def _():
        inv_l = pl.reciprocal(l_scr[...], approx=True)           # (tq, 128)
        attn_out = acc_scr[...] * _rep_minor(inv_l, acc_scr.shape[1])
        out = jnp.dot(attn_out, wo_ref[...],
                      preferred_element_type=jnp.float32) + bo_ref[...]
        o_ref[...] = out.astype(o_ref.dtype)


def flash_attn_out_proj(q, k, v, wo, bo, *, causal, tq, tkv):
    n, d = q.shape
    dim_out = wo.shape[1]
    kernel = functools.partial(attn_kernel, causal=causal)
    return pl.pallas_call(
        kernel,
        out_shape=jax.ShapeDtypeStruct((n, dim_out), jnp.float32),
        grid_spec=pltpu.PrefetchScalarGridSpec(
            num_scalar_prefetch=0,
            grid=(n // tq, n // tkv),
            in_specs=[
                pl.BlockSpec((tq, d), lambda qi, ki: (qi, 0)),
                pl.BlockSpec((tkv, d), lambda qi, ki: (ki, 0)),
                pl.BlockSpec((tkv, d), lambda qi, ki: (ki, 0)),
                pl.BlockSpec((d, dim_out), lambda qi, ki: (0, 0)),
                pl.BlockSpec((1, dim_out), lambda qi, ki: (0, 0)),
            ],
            out_specs=pl.BlockSpec((tq, dim_out), lambda qi, ki: (qi, 0)),
            scratch_shapes=[
                pltpu.VMEM((tq, _STAT_LANES), jnp.float32),  # running max m (lane-rep)
                pltpu.VMEM((tq, _STAT_LANES), jnp.float32),  # running denom l (lane-rep)
                pltpu.VMEM((tq, d), jnp.float32),            # un-normalized acc
            ]),
        compiler_params=pltpu.CompilerParams(
            dimension_semantics=("parallel", "arbitrary")),
    )(q, k, v, wo, bo)


def attention_forward(x, params, *, causal=False,
                      tm_target=512, tq_target=256, tkv_target=256):
    """Full Attention.forward: fused qkv proj -> online softmax -> out proj."""
    n = x.shape[0]
    dim_inner = params["w_qkv"].shape[1] // 3
    scale = dim_inner ** -0.5
    tm = _pick_tile(n, tm_target)
    tq = _pick_tile(n, tq_target)
    tkv = _pick_tile(n, tkv_target)
    q, k, v = qkv_projection(x, params["w_qkv"], scale=scale, tm=tm)
    return flash_attn_out_proj(q, k, v, params["wo"], params["bo"],
                               causal=causal, tq=tq, tkv=tkv)


# ------------------------ pure-JAX reference check ------------------------
def attention_ref(x, p, *, causal):
    wq, wk, wv = jnp.split(p["w_qkv"], 3, axis=1)
    dim_inner = wq.shape[1]
    scale = dim_inner ** -0.5
    q = x @ wq
    k = x @ wk
    v = x @ wv
    sim = (q @ k.T) * scale
    if causal:
        n = sim.shape[0]
        mask = jnp.triu(jnp.ones((n, n), dtype=bool), 1)
        sim = jnp.where(mask, _MASK_VALUE, sim)
    attn = jax.nn.softmax(sim, axis=-1)
    out = attn @ v
    return out @ p["wo"] + p["bo"]


# ------------------------------- test main --------------------------------
if __name__ == "__main__":
    # Small, lane-aligned shapes consistent with the module's unbatched (n, d)
    # input: seq_len=256 tokens, dim_in=dim_inner=dim_out=128.
    seq_len, dim_in, dim_inner, dim_out = 256, 128, 128, 128

    key = jax.random.PRNGKey(0)
    kx, kq, kk, kv, ko, kb = jax.random.split(key, 6)

    def uniform(k, shape, bound):
        return jax.random.uniform(k, shape, jnp.float32, -bound, bound)

    x = jax.random.normal(kx, (seq_len, dim_in), jnp.float32)
    b_qkv = 1.0 / np.sqrt(dim_in)     # nn.Linear default init bound
    b_out = 1.0 / np.sqrt(dim_inner)
    wq = uniform(kq, (dim_in, dim_inner), b_qkv)
    wk = uniform(kk, (dim_in, dim_inner), b_qkv)
    wv = uniform(kv, (dim_in, dim_inner), b_qkv)
    params = dict(
        # Concatenated once at param-setup time (one fused MXU matmul in kernel 1).
        # NOTE: PyTorch nn.Linear stores (out, in); transpose at import time.
        w_qkv=jnp.concatenate([wq, wk, wv], axis=1),
        wo=uniform(ko, (dim_inner, dim_out), b_out),
        bo=uniform(kb, (1, dim_out), b_out),
    )

    for causal in (False, True):
        out = jax.block_until_ready(attention_forward(x, params, causal=causal))
        ref = jax.block_until_ready(attention_ref(x, params, causal=causal))
        # bf16 q/k/v intermediates -> slightly looser tolerance than pure-f32.
        np.testing.assert_allclose(np.asarray(out), np.asarray(ref),
                                   rtol=2e-2, atol=2e-2)

    print("KERNEL_OK")
</pallas_src>

<mosaic_0001>
module attributes {stable_mosaic.version = 11 : i64} {
  func.func @qkv_proj_kernel(%arg0: i32, %arg1: memref<256x128xf32, #tpu.memory_space<vmem>>, %arg2: memref<128x384xf32, #tpu.memory_space<vmem>>, %arg3: memref<256x128xbf16, #tpu.memory_space<vmem>>, %arg4: memref<256x128xbf16, #tpu.memory_space<vmem>>, %arg5: memref<256x128xbf16, #tpu.memory_space<vmem>>) attributes {dimension_semantics = [#tpu.dimension_semantics<parallel>], iteration_bounds = array<i64: 1>, scalar_prefetch = 0 : i64, scratch_operands = 0 : i64, tpu.core_type = #tpu.core_type<tc>, window_params = [{transform_indices = @transform_0, window_bounds = array<i64: 256, 128>}, {pipeline_mode = #tpu.pipeline_mode<synchronous>, transform_indices = @transform_1, window_bounds = array<i64: 128, 384>}, {transform_indices = @transform_2, window_bounds = array<i64: 256, 128>}, {transform_indices = @transform_3, window_bounds = array<i64: 256, 128>}, {transform_indices = @transform_4, window_bounds = array<i64: 256, 128>}]} {
    %c0 = arith.constant 0 : index
    %c0_0 = arith.constant 0 : index
    %0 = vector.load %arg1[%c0, %c0_0] : memref<256x128xf32, #tpu.memory_space<vmem>>, vector<256x128xf32>
    %c0_1 = arith.constant 0 : index
    %c0_2 = arith.constant 0 : index
    %1 = vector.load %arg2[%c0_1, %c0_2] : memref<128x384xf32, #tpu.memory_space<vmem>>, vector<128x384xf32>
    %cst = arith.constant dense<0.000000e+00> : vector<256x384xf32>
    %2 = tpu.matmul %0, %1, %cst {dimension_numbers = #tpu.dot_dimension_numbers<[1], [0], [0], [1], [0, 0, 1, 1], [], []>} : vector<256x128xf32>, vector<128x384xf32>, vector<256x384xf32> -> vector<256x384xf32>
    %3 = vector.extract_strided_slice %2 {offsets = [0, 0], sizes = [256, 128], strides = [1, 1]} : vector<256x384xf32> to vector<256x128xf32>
    %cst_3 = arith.constant 0.0883883461 : f32
    %4 = vector.broadcast %cst_3 : f32 to vector<256x128xf32>
    %5 = arith.mulf %3, %4 : vector<256x128xf32>
    %6 = arith.truncf %5 : vector<256x128xf32> to vector<256x128xbf16>
    %c0_4 = arith.constant 0 : index
    %c0_5 = arith.constant 0 : index
    %7 = vector.load %arg3[%c0_4, %c0_5] : memref<256x128xbf16, #tpu.memory_space<vmem>>, vector<256x128xbf16>
    tpu.vector_store %arg3[%c0_4, %c0_5], %6 {strides = array<i32>} : memref<256x128xbf16, #tpu.memory_space<vmem>>, vector<256x128xbf16>,
    %8 = vector.extract_strided_slice %2 {offsets = [0, 128], sizes = [256, 128], strides = [1, 1]} : vector<256x384xf32> to vector<256x128xf32>
    %9 = arith.truncf %8 : vector<256x128xf32> to vector<256x128xbf16>
    %c0_6 = arith.constant 0 : index
    %c0_7 = arith.constant 0 : index
    %10 = vector.load %arg4[%c0_6, %c0_7] : memref<256x128xbf16, #tpu.memory_space<vmem>>, vector<256x128xbf16>
    tpu.vector_store %arg4[%c0_6, %c0_7], %9 {strides = array<i32>} : memref<256x128xbf16, #tpu.memory_space<vmem>>, vector<256x128xbf16>,
    %11 = vector.extract_strided_slice %2 {offsets = [0, 256], sizes = [256, 128], strides = [1, 1]} : vector<256x384xf32> to vector<256x128xf32>
    %12 = arith.truncf %11 : vector<256x128xf32> to vector<256x128xbf16>
    %c0_8 = arith.constant 0 : index
    %c0_9 = arith.constant 0 : index
    %13 = vector.load %arg5[%c0_8, %c0_9] : memref<256x128xbf16, #tpu.memory_space<vmem>>, vector<256x128xbf16>
    tpu.vector_store %arg5[%c0_8, %c0_9], %12 {strides = array<i32>} : memref<256x128xbf16, #tpu.memory_space<vmem>>, vector<256x128xbf16>,
    return
  }
  func.func @transform_0(%arg0: i32) -> (i32, i32) {
    %c0_i32 = arith.constant 0 : i32
    %c0_i32_0 = arith.constant 0 : i32
    return %arg0, %c0_i32 : i32, i32
  }
  func.func @transform_1(%arg0: i32) -> (i32, i32) {
    %c0_i32 = arith.constant 0 : i32
    %c0_i32_0 = arith.constant 0 : i32
    %c0_i32_1 = arith.constant 0 : i32
    return %c0_i32, %c0_i32_0 : i32, i32
  }
  func.func @transform_2(%arg0: i32) -> (i32, i32) {
    %c0_i32 = arith.constant 0 : i32
    %c0_i32_0 = arith.constant 0 : i32
    return %arg0, %c0_i32 : i32, i32
  }
  func.func @transform_3(%arg0: i32) -> (i32, i32) {
    %c0_i32 = arith.constant 0 : i32
    %c0_i32_0 = arith.constant 0 : i32
    return %arg0, %c0_i32 : i32, i32
  }
  func.func @transform_4(%arg0: i32) -> (i32, i32) {
    %c0_i32 = arith.constant 0 : i32
    %c0_i32_0 = arith.constant 0 : i32
    return %arg0, %c0_i32 : i32, i32
  }
}

</mosaic_0001>

<bundles_post_ra>
// kernel: tpu_custom_call.1
= control target key start
LH: loop header
LB: loop body
LE: loop exit
PB: predicated region body
PF: predicated region fallthrough
CT: control target
= control target key end

     0   :  { %10 = vsyncpa [#allocation3], 0  ;;  %s2178_s0 = inlined_call_operand.hbm [shape: f32[256,128], index: 0, kind: input, shape index: {}]   ;;  %s2179_s1 = inlined_call_operand.hbm [shape: f32[128,384], index: 1, kind: input, shape index: {}]   ;;  %s2180_s2 = inlined_call_operand.hbm [shape: bf16[256,128], index: 2, kind: output, shape index: {0}]   ;;  %s2181_s3 = inlined_call_operand.hbm [shape: bf16[256,128], index: 3, kind: output, shape index: {1}]   ;;  %s2182_s4 = inlined_call_operand.hbm [shape: bf16[256,128], index: 4, kind: output, shape index: {2}]  }
   0x1   :  { %11 = vsyncpa [#allocation6], 0 }
   0x2   :  { %12 = vsyncpa [#allocation4], 0 }
   0x3   :  { %13 = vsyncpa [#allocation9], 0  ;;  %s1982_s15 = smov [#allocation2]   ;;  %s1864_s19 = scalar_lea.hbm %s2178_s0, 4096 }
   0x4   :  { %s19_s16 = sshll.u32 %s1982_s15, 4  ;;  %p1865_p0 = scmp.ne.s32.totalorder %s2178_s0, %s1864_s19  ;;  %s20_s16 = int_to_ptr.vmem [resolvable:$true] %s19_s16 }
   0x5   :  { %p1868_p1 = scmp.lt.u32.totalorder %s1864_s19, %s2178_s0 }
   0x7   :  { %p1870_p2 = pnand %p1868_p1, %p1865_p0 }
   0x9   :  { %1873 = shalt.err (!%p1870_p2)
}
   0xa   :  { %s1874_s24 = scalar_lea.vmem %s20_s16, 4096  ;;  %p1879_p4 = scmp.lt.s32.totalorder %s20_s16, %s20_s16 }
   0xb   :  { %p1875_p3 = scmp.ne.s32.totalorder %s20_s16, %s1874_s24  ;;  %p1880_p5 = scmp.lt.s32.totalorder %s1874_s24, %s1874_s24 }
   0xd   :  { %p1881_p6 = por %p1880_p5, %p1879_p4 }
   0xf   :  { %p1882_p7 = pnand %p1881_p6, %p1875_p3 }
  0x11   :  { %1885 = shalt.err (!%p1882_p7)
}
  0x12   :  { %s1983_s25 = smov 128   ;;  %s1984_s26 = smov 8  }
  0x13   :  { %25 = dma.hbm_to_vmem [thread:$0]  %s2178_s0, 4096, %s20_s16, [#allocation3], %s1983_s25, %s1983_s25, %s1984_s26  }
  0x14   :  { %s1985_s29 = smov [#allocation5]   ;;  %s1886_s7 = scalar_lea.hbm %s2179_s1, 6144 }
  0x15   :  { %s31_s30 = sshll.u32 %s1985_s29, 4  ;;  %p1887_p8 = scmp.ne.s32.totalorder %s2179_s1, %s1886_s7  ;;  %s32_s30 = int_to_ptr.vmem [resolvable:$true] %s31_s30 }
  0x16   :  { %p1890_p9 = scmp.lt.u32.totalorder %s1886_s7, %s2179_s1 }
  0x18   :  { %p1892_p10 = pnand %p1890_p9, %p1887_p8 }
  0x1a   :  { %1895 = shalt.err (!%p1892_p10)
}
  0x1b   :  { %s1896_s12 = scalar_lea.vmem %s32_s30, 6144  ;;  %p1901_p12 = scmp.lt.s32.totalorder %s32_s30, %s32_s30 }
  0x1c   :  { %p1897_p11 = scmp.ne.s32.totalorder %s32_s30, %s1896_s12  ;;  %p1902_p13 = scmp.lt.s32.totalorder %s1896_s12, %s1896_s12 }
  0x1e   :  { %p1903_p0 = por %p1902_p13, %p1901_p12 }
  0x20   :  { %p1904_p1 = pnand %p1903_p0, %p1897_p11 }
  0x22   :  { %1907 = shalt.err (!%p1904_p1)
}
  0x23   :  { %s1986_s0 = smov 384   ;;  %s1987_s13 = smov 24  }
  0x24   :  { %37 = dma.hbm_to_vmem [thread:$0]  %s2179_s1, 6144, %s32_s30, [#allocation6], %s1986_s0, %s1986_s0, %s1987_s13  }
  0x25   :  { %1974 = dma.done.wait [#allocation3], 4096  }
  0x26   :  { %1975 = vsyncadd [#allocation3], 4294963200 }
  0x27   :  { %1976 = dma.done.wait [#allocation6], 6144  }
  0x28   :  { %1977 = vsyncadd [#allocation6], 4294961152  ;;  %v1988_v0 = vmov 0.0   ;;  %v77_v1 = vld [vmem:[#allocation5 + $0x8] sm:$0xff]  ;;  %v80_v2 = vld [vmem:[#allocation5 + $0x20] sm:$0xff]  ;;  %s1989_s1 = smov [#allocation8]  }
  0x29   :  { %188 = vmatprep.mubr.f32.mxu0 %v1988_v0  ;;  %332 = vmatprep.mubr.f32.mxu1 %v1988_v0  ;;  %v76_v3 = vld [vmem:[#allocation5] sm:$0xff]  ;;  %v1772_v4 = vpack.c.bf16 %v80_v2, %v77_v1  ;;  %v79_v5 = vld [vmem:[#allocation5 + $0x18] sm:$0xff]  ;;  %v86_v7 = vld [vmem:[#allocation5 + $0x50] sm:$0xff]  ;;  %s1135_s16 = sshll.u32 %s1989_s1, 4  ;;  %s1990_s17 = smov [#allocation7]   ;;  %s1136_s16 = int_to_ptr.vmem [resolvable:$true] %s1135_s16 }
  0x2a   :  { %v83_v6 = vld [vmem:[#allocation5 + $0x38] sm:$0xff]  ;;  %v1774_v8 = vpack.c.bf16 %v79_v5, %v76_v3  ;;  %v82_v10 = vld [vmem:[#allocation5 + $0x30] sm:$0xff]  ;;  %v85_v11 = vld [vmem:[#allocation5 + $0x48] sm:$0xff]  ;;  %s1123_s18 = sshll.u32 %s1990_s17, 4  ;;  %s1991_s19 = smov [#allocation10]   ;;  %s2119_s18 = int_to_ptr.vmem [resolvable:$true] %s1123_s18 }
  0x2b   :  { %v1776_v9 = vpack.c.bf16 %v86_v7, %v83_v6  ;;  %v89_v12 = vld [vmem:[#allocation5 + $0x68] sm:$0xff]  ;;  %1773 = vmatprep.subr.bf16.mxu0 %v1772_v4  ;;  %1836 = vmatprep.subr.bf16.mxu1 %v1772_v4  ;;  %v92_v13 = vld [vmem:[#allocation5 + $0x80] sm:$0xff]  ;;  %v1778_v14 = vpack.c.bf16 %v85_v11, %v82_v10  ;;  %v91_v17 = vld [vmem:[#allocation5 + $0x78] sm:$0xff]  ;;  %s1147_s20 = sshll.u32 %s1991_s19, 4  ;;  %s1908_s21 = scalar_lea.vmem %s1136_s16, 2048  ;;  %s2121_s20 = int_to_ptr.vmem [resolvable:$true] %s1147_s20 }
  0x2c   :  { %1775 = vmatpush1.bf16.msra.mxu0 %v1774_v8  ;;  %1844 = vmatpush1.bf16.msra.mxu1 %v1774_v8  ;;  %v1780_v15 = vpack.c.bf16 %v92_v13, %v89_v12  ;;  %v88_v16 = vld [vmem:[#allocation5 + $0x60] sm:$0xff]  ;;  %v95_v18 = vld [vmem:[#allocation5 + $0x98] sm:$0xff]  ;;  %v98_v19 = vld [vmem:[#allocation5 + $0xb0] sm:$0xff]  ;;  %p1909_p2 = scmp.ne.s32.totalorder %s1136_s16, %s1908_s21  ;;  %p1913_p3 = scmp.lt.s32.totalorder %s1136_s16, %s1136_s16 }
  0x2d   :  { %1777 = vmatprep.subr.bf16.mxu0 %v1776_v9  ;;  %1837 = vmatprep.subr.bf16.mxu1 %v1776_v9  ;;  %v1782_v20 = vpack.c.bf16 %v91_v17, %v88_v16  ;;  %v1784_v21 = vpack.c.bf16 %v98_v19, %v95_v18  ;;  %v94_v22 = vld [vmem:[#allocation5 + $0x90] sm:$0xff]  ;;  %v97_v23 = vld [vmem:[#allocation5 + $0xa8] sm:$0xff]  ;;  %v104_v25 = vld [vmem:[#allocation5 + $0xe0] sm:$0xff]  ;;  %p1914_p4 = scmp.lt.s32.totalorder %s1908_s21, %s1908_s21 }
  0x2e   :  { %v101_v24 = vld [vmem:[#allocation5 + $0xc8] sm:$0xff]  ;;  %v1786_v26 = vpack.c.bf16 %v97_v23, %v94_v22  ;;  %v100_v28 = vld [vmem:[#allocation5 + $0xc0] sm:$0xff]  ;;  %v103_v29 = vld [vmem:[#allocation5 + $0xd8] sm:$0xff] }
  0x2f   :  { %v1788_v27 = vpack.c.bf16 %v104_v25, %v101_v24  ;;  %v107_v30 = vld [vmem:[#allocation5 + $0xf8] sm:$0xff]  ;;  %v110_v31 = vld [vmem:[#allocation5 + $0x110] sm:$0xff]  ;;  %v1790_v32 = vpack.c.bf16 %v103_v29, %v100_v28  ;;  %v109_v35 = vld [vmem:[#allocation5 + $0x108] sm:$0xff]  ;;  %p1915_p5 = por %p1914_p4, %p1913_p3 }
  0x30   :  { %1779 = vmatpush1.bf16.msra.mxu0 %v1778_v14  ;;  %1845 = vmatpush1.bf16.msra.mxu1 %v1778_v14  ;;  %v1792_v33 = vpack.c.bf16 %v110_v31, %v107_v30  ;;  %v106_v34 = vld [vmem:[#allocation5 + $0xf0] sm:$0xff]  ;;  %v113_v36 = vld [vmem:[#allocation5 + $0x128] sm:$0xff]  ;;  %v116_v37 = vld [vmem:[#allocation5 + $0x140] sm:$0xff] }
  0x31   :  { %1781 = vmatprep.subr.bf16.mxu0 %v1780_v15  ;;  %1838 = vmatprep.subr.bf16.mxu1 %v1780_v15  ;;  %v1794_v38 = vpack.c.bf16 %v109_v35, %v106_v34  ;;  %v1796_v39 = vpack.c.bf16 %v116_v37, %v113_v36  ;;  %v112_v40 = vld [vmem:[#allocation5 + $0x120] sm:$0xff]  ;;  %v115_v41 = vld [vmem:[#allocation5 + $0x138] sm:$0xff]  ;;  %v122_v43 = vld [vmem:[#allocation5 + $0x170] sm:$0xff]  ;;  %p1916_p6 = pnand %p1915_p5, %p1909_p2 }
  0x32   :  { %v119_v42 = vld [vmem:[#allocation5 + $0x158] sm:$0xff]  ;;  %v1798_v44 = vpack.c.bf16 %v115_v41, %v112_v40  ;;  %v118_v46 = vld [vmem:[#allocation5 + $0x150] sm:$0xff]  ;;  %v121_v47 = vld [vmem:[#allocation5 + $0x168] sm:$0xff] }
  0x33   :  { %v1800_v45 = vpack.c.bf16 %v122_v43, %v119_v42  ;;  %v78_v48 = vld [vmem:[#allocation5 + $0x10] sm:$0xff]  ;;  %v81_v49 = vld [vmem:[#allocation5 + $0x28] sm:$0xff]  ;;  %v1802_v50 = vpack.c.bf16 %v121_v47, %v118_v46  ;;  %v84_v52 = vld [vmem:[#allocation5 + $0x40] sm:$0xff] }
  0x34   :  { %1783 = vmatpush1.bf16.msra.mxu0 %v1782_v20  ;;  %1846 = vmatpush1.bf16.msra.mxu1 %v1782_v20  ;;  %v1804_v51 = vpack.c.bf16 %v81_v49, %v78_v48  ;;  %v87_v53 = vld [vmem:[#allocation5 + $0x58] sm:$0xff]  ;;  %v2045_v54 = vld [vmem:[#allocation2] sm:$0xff]  ;;  %v90_v57 = vld [vmem:[#allocation5 + $0x70] sm:$0xff] }
  0x35   :  { %1785 = vmatprep.subr.bf16.mxu0 %v1784_v21  ;;  %1839 = vmatprep.subr.bf16.mxu1 %v1784_v21  ;;  %v2047_v55 = vld [vmem:[#allocation2 + $0xc0] sm:$0xff]  ;;  %v1808_v56 = vpack.c.bf16 %v87_v53, %v84_v52  ;;  %v93_v58 = vld [vmem:[#allocation5 + $0x88] sm:$0xff]  ;;  %v99_v63 = vld [vmem:[#allocation5 + $0xb8] sm:$0xff] }
  0x36   :  { %v2052_v59 = vld [vmem:[#allocation2 + $0x8] sm:$0xff]  ;;  %v1812_v61 = vpack.c.bf16 %v93_v58, %v90_v57  ;;  %v96_v62 = vld [vmem:[#allocation5 + $0xa0] sm:$0xff]  ;;  %v2060_v1 = vld [vmem:[#allocation2 + $0x10] sm:$0xff] }
  0x37   :  { %v2054_v60 = vld [vmem:[#allocation2 + $0xc8] sm:$0xff]  ;;  %v2062_v2 = vld [vmem:[#allocation2 + $0xd0] sm:$0xff]  ;;  %v1816_v3 = vpack.c.bf16 %v99_v63, %v96_v62  ;;  %v47_v6 = vld [vmem:[#allocation2 + $0x18] sm:$0xff] }
  0x38   :  { %1787 = vmatpush1.bf16.msra.mxu0 %v1786_v26  ;;  %1847 = vmatpush1.bf16.msra.mxu1 %v1786_v26  ;;  %v102_v4 = vld [vmem:[#allocation5 + $0xd0] sm:$0xff]  ;;  %v105_v5 = vld [vmem:[#allocation5 + $0xe8] sm:$0xff]  ;;  %v2068_v7 = vld [vmem:[#allocation2 + $0xd8] sm:$0xff] }
  0x39   :  { %1789 = vmatprep.subr.bf16.mxu0 %v1788_v27  ;;  %1840 = vmatprep.subr.bf16.mxu1 %v1788_v27  ;;  %v1820_v8 = vpack.c.bf16 %v105_v5, %v102_v4  ;;  %v108_v9 = vld [vmem:[#allocation5 + $0x100] sm:$0xff]  ;;  %v111_v10 = vld [vmem:[#allocation5 + $0x118] sm:$0xff]  ;;  %v114_v14 = vld [vmem:[#allocation5 + $0x130] sm:$0xff] }
  0x3a   :  { %v48_v11 = vld [vmem:[#allocation2 + $0x20] sm:$0xff]  ;;  %v1824_v13 = vpack.c.bf16 %v111_v10, %v108_v9  ;;  %v117_v15 = vld [vmem:[#allocation5 + $0x148] sm:$0xff]  ;;  %v123_v20 = vld [vmem:[#allocation5 + $0x178] sm:$0xff] }
  0x3b   :  { %v2073_v12 = vld [vmem:[#allocation2 + $0xe0] sm:$0xff]  ;;  %v49_v16 = vld [vmem:[#allocation2 + $0x28] sm:$0xff]  ;;  %v1828_v18 = vpack.c.bf16 %v117_v15, %v114_v14  ;;  %v50_v21 = vld [vmem:[#allocation2 + $0x30] sm:$0xff] }
  0x3c   :  { %1791 = vmatpush1.bf16.msra.mxu0 %v1790_v32  ;;  %1848 = vmatpush1.bf16.msra.mxu1 %v1790_v32  ;;  %v2078_v17 = vld [vmem:[#allocation2 + $0xe8] sm:$0xff]  ;;  %v120_v19 = vld [vmem:[#allocation5 + $0x160] sm:$0xff]  ;;  %v2083_v22 = vld [vmem:[#allocation2 + $0xf0] sm:$0xff] }
  0x3d   :  { %1793 = vmatprep.subr.bf16.mxu0 %v1792_v33  ;;  %1841 = vmatprep.subr.bf16.mxu1 %v1792_v33  ;;  %v1832_v23 = vpack.c.bf16 %v123_v20, %v120_v19  ;;  %v51_v24 = vld [vmem:[#allocation2 + $0x38] sm:$0xff]  ;;  %v52_v26 = vld [vmem:[#allocation2 + $0x40] sm:$0xff]  ;;  %v53_v27 = vld [vmem:[#allocation2 + $0x48] sm:$0xff] }
  0x3e   :  { %v2088_v25 = vld [vmem:[#allocation2 + $0xf8] sm:$0xff]  ;;  %v54_v28 = vld [vmem:[#allocation2 + $0x50] sm:$0xff]  ;;  %v56_v30 = vld [vmem:[#allocation2 + $0x60] sm:$0xff] }
  0x3f   :  { %v55_v29 = vld [vmem:[#allocation2 + $0x58] sm:$0xff]  ;;  %v57_v31 = vld [vmem:[#allocation2 + $0x68] sm:$0xff]  ;;  %v58_v32 = vld [vmem:[#allocation2 + $0x70] sm:$0xff] }
  0x40   :  { %1795 = vmatpush1.bf16.msra.mxu0 %v1794_v38  ;;  %1849 = vmatpush1.bf16.msra.mxu1 %v1794_v38  ;;  %v59_v33 = vld [vmem:[#allocation2 + $0x78] sm:$0xff]  ;;  %v60_v34 = vld [vmem:[#allocation2 + $0x80] sm:$0xff]  ;;  %v61_v35 = vld [vmem:[#allocation2 + $0x88] sm:$0xff] }
  0x41   :  { %1797 = vmatprep.subr.bf16.mxu0 %v1796_v39  ;;  %1842 = vmatprep.subr.bf16.mxu1 %v1796_v39  ;;  %v62_v36 = vld [vmem:[#allocation2 + $0x90] sm:$0xff]  ;;  %v63_v37 = vld [vmem:[#allocation2 + $0x98] sm:$0xff]  ;;  %v64_v38 = vld [vmem:[#allocation2 + $0xa0] sm:$0xff] }
  0x42   :  { %v65_v39 = vld [vmem:[#allocation2 + $0xa8] sm:$0xff]  ;;  %v66_v40 = vld [vmem:[#allocation2 + $0xb0] sm:$0xff]  ;;  %v67_v41 = vld [vmem:[#allocation2 + $0xb8] sm:$0xff] }
  0x44   :  { %1799 = vmatpush1.bf16.msra.mxu0 %v1798_v44  ;;  %1850 = vmatpush1.bf16.msra.mxu1 %v1798_v44 }
  0x45   :  { %1801 = vmatprep.subr.bf16.mxu0 %v1800_v45  ;;  %1843 = vmatprep.subr.bf16.mxu1 %v1800_v45 }
  0x48   :  { %1803 = vmatpush1.bf16.msra.mxu0 %v1802_v50  ;;  %1851 = vmatpush1.bf16.msra.mxu1 %v1802_v50 }
  0x49   :  { %1805 = vmatprep.subr.bf16.mxu1 %v1804_v51 }
  0x4b   :  { %189 = vmatmul.mubr.f32.vlgmr.msra.gmra.mrb[0].mxu0 %v2045_v54  ;;  %333 = vmatmul.mubr.f32.vlgmr.msra.gmra.mrb[0].mxu1 %v2047_v55 }
  0x4c   :  { %1807 = vmatpush3.bf16.msra.mxu1 %v1804_v51  ;;  %194 = vmatprep.mubr.f32.mxu0 %v1988_v0 }
  0x4d   :  { %338 = vmatprep.mubr.f32.mxu1 %v1988_v0  ;;  %1809 = vmatprep.subr.bf16.mxu1 %v1808_v56 }
  0x4f   :  { %195 = vmatmul.mubr.f32.gmra.mrb[2].mxu0 %v2052_v59  ;;  %339 = vmatmul.mubr.f32.gmra.mrb[2].mxu1 %v2054_v60 }
  0x50   :  { %1811 = vmatpush3.bf16.msra.mxu1 %v1808_v56  ;;  %200 = vmatprep.mubr.f32.mxu0 %v1988_v0 }
  0x51   :  { %344 = vmatprep.mubr.f32.mxu1 %v1988_v0  ;;  %1813 = vmatprep.subr.bf16.mxu1 %v1812_v61 }
  0x53   :  { %201 = vmatmul.mubr.f32.gmra.mrb[4].mxu0 %v2060_v1  ;;  %345 = vmatmul.mubr.f32.gmra.mrb[4].mxu1 %v2062_v2 }
  0x54   :  { %1815 = vmatpush3.bf16.msra.mxu1 %v1812_v61  ;;  %206 = vmatprep.mubr.f32.mxu0 %v1988_v0 }
  0x55   :  { %350 = vmatprep.mubr.f32.mxu1 %v1988_v0  ;;  %1817 = vmatprep.subr.bf16.mxu1 %v1816_v3 }
  0x57   :  { %207 = vmatmul.mubr.f32.gmra.mrb[6].mxu0 %v47_v6  ;;  %351 = vmatmul.mubr.f32.gmra.mrb[6].mxu1 %v2068_v7 }
  0x58   :  { %1819 = vmatpush3.bf16.msra.mxu1 %v1816_v3  ;;  %212 = vmatprep.mubr.f32.mxu0 %v1988_v0 }
  0x59   :  { %356 = vmatprep.mubr.f32.mxu1 %v1988_v0  ;;  %1821 = vmatprep.subr.bf16.mxu1 %v1820_v8 }
  0x5b   :  { %213 = vmatmul.mubr.f32.gmra.mrb[8].mxu0 %v48_v11  ;;  %357 = vmatmul.mubr.f32.gmra.mrb[8].mxu1 %v2073_v12 }
  0x5c   :  { %1823 = vmatpush3.bf16.msra.mxu1 %v1820_v8  ;;  %218 = vmatprep.mubr.f32.mxu0 %v1988_v0 }
  0x5d   :  { %362 = vmatprep.mubr.f32.mxu1 %v1988_v0  ;;  %1825 = vmatprep.subr.bf16.mxu1 %v1824_v13 }
  0x5f   :  { %219 = vmatmul.mubr.f32.gmra.mrb[10].mxu0 %v49_v16  ;;  %363 = vmatmul.mubr.f32.gmra.mrb[10].mxu1 %v2078_v17 }
  0x60   :  { %1827 = vmatpush3.bf16.msra.mxu1 %v1824_v13  ;;  %224 = vmatprep.mubr.f32.mxu0 %v1988_v0 }
  0x61   :  { %368 = vmatprep.mubr.f32.mxu1 %v1988_v0  ;;  %1829 = vmatprep.subr.bf16.mxu1 %v1828_v18 }
  0x63   :  { %225 = vmatmul.mubr.f32.gmra.mrb[12].mxu0 %v50_v21  ;;  %369 = vmatmul.mubr.f32.gmra.mrb[12].mxu1 %v2083_v22 }
  0x64   :  { %1831 = vmatpush3.bf16.msra.mxu1 %v1828_v18  ;;  %230 = vmatprep.mubr.f32.mxu0 %v1988_v0 }
  0x65   :  { %374 = vmatprep.mubr.f32.mxu1 %v1988_v0  ;;  %1833 = vmatprep.subr.bf16.mxu1 %v1832_v23 }
  0x67   :  { %231 = vmatmul.mubr.f32.gmra.mrb[14].mxu0 %v51_v24  ;;  %375 = vmatmul.mubr.f32.gmra.mrb[14].mxu1 %v2088_v25 }
  0x68   :  { %1835 = vmatpush3.bf16.msra.mxu1 %v1832_v23  ;;  %236 = vmatprep.mubr.f32.mxu0 %v1988_v0 }
  0x69   :  { %1724 = vmatprep.mubr.f32.mxu1 %v2045_v54 }
  0x6b   :  { %237 = vmatmul.mubr.f32.gmra.mrb[16].mxu0 %v52_v26  ;;  %1725 = vmatmul.mubr.f32.vlgmr.msra.gmra.mrb[16].mxu1 %v2052_v59 }
  0x6c   :  { %242 = vmatprep.mubr.f32.mxu0 %v1988_v0  ;;  %1727 = vmatprep.mubr.f32.mxu1 %v2060_v1 }
  0x6f   :  { %243 = vmatmul.mubr.f32.gmra.mrb[18].mxu0 %v53_v27  ;;  %1728 = vmatmul.mubr.f32.gmra.mrb[18].mxu1 %v47_v6 }
  0x70   :  { %248 = vmatprep.mubr.f32.mxu0 %v1988_v0  ;;  %1730 = vmatprep.mubr.f32.mxu1 %v48_v11 }
  0x73   :  { %249 = vmatmul.mubr.f32.gmra.mrb[20].mxu0 %v54_v28  ;;  %1731 = vmatmul.mubr.f32.gmra.mrb[20].mxu1 %v49_v16 }
  0x74   :  { %254 = vmatprep.mubr.f32.mxu0 %v1988_v0  ;;  %1733 = vmatprep.mubr.f32.mxu1 %v50_v21 }
  0x77   :  { %255 = vmatmul.mubr.f32.gmra.mrb[22].mxu0 %v55_v29  ;;  %1734 = vmatmul.mubr.f32.gmra.mrb[22].mxu1 %v51_v24 }
  0x78   :  { %260 = vmatprep.mubr.f32.mxu0 %v1988_v0  ;;  %1736 = vmatprep.mubr.f32.mxu1 %v52_v26 }
  0x7b   :  { %261 = vmatmul.mubr.f32.gmra.mrb[24].mxu0 %v56_v30  ;;  %1737 = vmatmul.mubr.f32.gmra.mrb[24].mxu1 %v53_v27 }
  0x7c   :  { %266 = vmatprep.mubr.f32.mxu0 %v1988_v0  ;;  %1739 = vmatprep.mubr.f32.mxu1 %v54_v28 }
  0x7f   :  { %267 = vmatmul.mubr.f32.gmra.mrb[26].mxu0 %v57_v31  ;;  %1740 = vmatmul.mubr.f32.gmra.mrb[26].mxu1 %v55_v29 }
  0x80   :  { %272 = vmatprep.mubr.f32.mxu0 %v1988_v0  ;;  %1742 = vmatprep.mubr.f32.mxu1 %v56_v30 }
  0x83   :  { %273 = vmatmul.mubr.f32.gmra.mrb[28].mxu0 %v58_v32  ;;  %1743 = vmatmul.mubr.f32.gmra.mrb[28].mxu1 %v57_v31 }
  0x84   :  { %278 = vmatprep.mubr.f32.mxu0 %v1988_v0  ;;  %1745 = vmatprep.mubr.f32.mxu1 %v58_v32 }
  0x87   :  { %279 = vmatmul.mubr.f32.gmra.mrb[30].mxu0 %v59_v33  ;;  %1746 = vmatmul.mubr.f32.gmra.mrb[30].mxu1 %v59_v33 }
  0x88   :  { %284 = vmatprep.mubr.f32.mxu0 %v1988_v0  ;;  %1748 = vmatprep.mubr.f32.mxu1 %v60_v34 }
  0x8b   :  { %285 = vmatmul.mubr.f32.gmra.mrb[32].mxu0 %v60_v34  ;;  %1749 = vmatmul.mubr.f32.gmra.mrb[32].mxu1 %v61_v35 }
  0x8c   :  { %290 = vmatprep.mubr.f32.mxu0 %v1988_v0  ;;  %1751 = vmatprep.mubr.f32.mxu1 %v62_v36 }
  0x8f   :  { %291 = vmatmul.mubr.f32.gmra.mrb[34].mxu0 %v61_v35  ;;  %1752 = vmatmul.mubr.f32.gmra.mrb[34].mxu1 %v63_v37 }
  0x90   :  { %296 = vmatprep.mubr.f32.mxu0 %v1988_v0  ;;  %1754 = vmatprep.mubr.f32.mxu1 %v64_v38 }
  0x93   :  { %297 = vmatmul.mubr.f32.gmra.mrb[36].mxu0 %v62_v36  ;;  %1755 = vmatmul.mubr.f32.gmra.mrb[36].mxu1 %v65_v39 }
  0x94   :  { %302 = vmatprep.mubr.f32.mxu0 %v1988_v0  ;;  %1757 = vmatprep.mubr.f32.mxu1 %v66_v40 }
  0x97   :  { %303 = vmatmul.mubr.f32.gmra.mrb[38].mxu0 %v63_v37  ;;  %1758 = vmatmul.mubr.f32.gmra.mrb[38].mxu1 %v67_v41 }
  0x98   :  { %308 = vmatprep.mubr.f32.mxu0 %v1988_v0  ;;  %1760 = vmatprep.mubr.f32.mxu1 %v2047_v55 }
  0x9b   :  { %309 = vmatmul.mubr.f32.gmra.mrb[40].mxu0 %v64_v38  ;;  %1761 = vmatmul.mubr.f32.gmra.mrb[40].mxu1 %v2054_v60 }
  0x9c   :  { %314 = vmatprep.mubr.f32.mxu0 %v1988_v0  ;;  %1763 = vmatprep.mubr.f32.mxu1 %v2062_v2 }
  0x9f   :  { %315 = vmatmul.mubr.f32.gmra.mrb[42].mxu0 %v65_v39  ;;  %1764 = vmatmul.mubr.f32.gmra.mrb[42].mxu1 %v2068_v7 }
  0xa0   :  { %320 = vmatprep.mubr.f32.mxu0 %v1988_v0  ;;  %1766 = vmatprep.mubr.f32.mxu1 %v2073_v12 }
  0xa3   :  { %321 = vmatmul.mubr.f32.gmra.mrb[44].mxu0 %v66_v40  ;;  %1767 = vmatmul.mubr.f32.gmra.mrb[44].mxu1 %v2078_v17 }
  0xa4   :  { %326 = vmatprep.mubr.f32.mxu0 %v1988_v0  ;;  %1769 = vmatprep.mubr.f32.mxu1 %v2083_v22 }
  0xa7   :  { %327 = vmatmul.mubr.f32.gmra.mrb[46].mxu0 %v67_v41  ;;  %1770 = vmatmul.mubr.f32.gmra.mrb[46].mxu1 %v2088_v25 }
 0x11e   :  { %v190_v42 = vpop.f32.mrb[0].mxu0  ;;  %v334_v43 = vpop.f32.mrb[0].mxu1 }
 0x11f   :  { %v192_v44 = vpop.f32.mrb[1].mxu0  ;;  %v336_v45 = vpop.f32.mrb[1].mxu1  ;;  %v606_v46 = vmul.f32 0.088388346, %v190_v42  ;;  %v630_v47 = vmul.f32 0.088388346, %v334_v43 }
 0x122   :  { %v196_v48 = vpop.f32.mrb[2].mxu0  ;;  %v340_v49 = vpop.f32.mrb[2].mxu1 }
 0x123   :  { %v607_v50 = vmul.f32 0.088388346, %v196_v48  ;;  %v631_v51 = vmul.f32 0.088388346, %v340_v49  ;;  %v198_v52 = vpop.f32.mrb[3].mxu0  ;;  %v342_v53 = vpop.f32.mrb[3].mxu1 }
 0x124   :  { %v1442_v54 = vpack.c.bf16 %v198_v52, %v192_v44  ;;  %v1502_v55 = vpack.c.bf16 %v342_v53, %v336_v45 }
 0x125   :  { %v1362_v0 = vpack.c.bf16 %v607_v50, %v606_v46  ;;  %v1422_v56 = vpack.c.bf16 %v631_v51, %v630_v47 }
 0x126   :  { %1443 = vst [vmem:[#allocation8] sm:$0xff] %v1442_v54   ;;  %1625 = vst [vmem:[#allocation8 + $0x60] sm:$0xff] %v1502_v55   ;;  %v202_v57 = vpop.f32.mrb[4].mxu0  ;;  %v346_v58 = vpop.f32.mrb[4].mxu1 }
 0x127   :  { %1363 = vst [vmem:[#allocation7] sm:$0xff] %v1362_v0   ;;  %1610 = vst [vmem:[#allocation7 + $0x60] sm:$0xff] %v1422_v56   ;;  %v204_v59 = vpop.f32.mrb[5].mxu0  ;;  %v348_v60 = vpop.f32.mrb[5].mxu1  ;;  %v608_v61 = vmul.f32 0.088388346, %v202_v57 }
 0x128   :  { %v632_v62 = vmul.f32 0.088388346, %v346_v58 }
 0x12a   :  { %v208_v63 = vpop.f32.mrb[6].mxu0  ;;  %v352_v1 = vpop.f32.mrb[6].mxu1 }
 0x12b   :  { %v609_v2 = vmul.f32 0.088388346, %v208_v63  ;;  %v633_v3 = vmul.f32 0.088388346, %v352_v1  ;;  %v210_v4 = vpop.f32.mrb[7].mxu0  ;;  %v354_v5 = vpop.f32.mrb[7].mxu1 }
 0x12c   :  { %v1447_v6 = vpack.c.bf16 %v210_v4, %v204_v59  ;;  %v1507_v7 = vpack.c.bf16 %v354_v5, %v348_v60 }
 0x12d   :  { %v1367_v8 = vpack.c.bf16 %v609_v2, %v608_v61  ;;  %v1427_v9 = vpack.c.bf16 %v633_v3, %v632_v62 }
 0x12e   :  { %1614 = vst [vmem:[#allocation8 + $0x8] sm:$0xff] %v1447_v6   ;;  %1626 = vst [vmem:[#allocation8 + $0x68] sm:$0xff] %v1507_v7   ;;  %v214_v10 = vpop.f32.mrb[8].mxu0  ;;  %v358_v11 = vpop.f32.mrb[8].mxu1 }
 0x12f   :  { %1599 = vst [vmem:[#allocation7 + $0x8] sm:$0xff] %v1367_v8   ;;  %1611 = vst [vmem:[#allocation7 + $0x68] sm:$0xff] %v1427_v9   ;;  %v216_v12 = vpop.f32.mrb[9].mxu0  ;;  %v360_v13 = vpop.f32.mrb[9].mxu1  ;;  %v610_v14 = vmul.f32 0.088388346, %v214_v10 }
 0x130   :  { %v634_v15 = vmul.f32 0.088388346, %v358_v11 }
 0x132   :  { %v220_v16 = vpop.f32.mrb[10].mxu0  ;;  %v364_v17 = vpop.f32.mrb[10].mxu1 }
 0x133   :  { %v611_v18 = vmul.f32 0.088388346, %v220_v16  ;;  %v635_v19 = vmul.f32 0.088388346, %v364_v17  ;;  %v222_v20 = vpop.f32.mrb[11].mxu0  ;;  %v366_v21 = vpop.f32.mrb[11].mxu1 }
 0x134   :  { %v1452_v22 = vpack.c.bf16 %v222_v20, %v216_v12  ;;  %v1512_v23 = vpack.c.bf16 %v366_v21, %v360_v13 }
 0x135   :  { %v1372_v24 = vpack.c.bf16 %v611_v18, %v610_v14  ;;  %v1432_v25 = vpack.c.bf16 %v635_v19, %v634_v15 }
 0x136   :  { %1615 = vst [vmem:[#allocation8 + $0x10] sm:$0xff] %v1452_v22   ;;  %1627 = vst [vmem:[#allocation8 + $0x70] sm:$0xff] %v1512_v23   ;;  %v226_v26 = vpop.f32.mrb[12].mxu0  ;;  %v370_v27 = vpop.f32.mrb[12].mxu1 }
 0x137   :  { %1600 = vst [vmem:[#allocation7 + $0x10] sm:$0xff] %v1372_v24   ;;  %1612 = vst [vmem:[#allocation7 + $0x70] sm:$0xff] %v1432_v25   ;;  %v228_v28 = vpop.f32.mrb[13].mxu0  ;;  %v372_v29 = vpop.f32.mrb[13].mxu1  ;;  %v612_v30 = vmul.f32 0.088388346, %v226_v26 }
 0x138   :  { %v636_v31 = vmul.f32 0.088388346, %v370_v27 }
 0x13a   :  { %v232_v32 = vpop.f32.mrb[14].mxu0  ;;  %v376_v33 = vpop.f32.mrb[14].mxu1 }
 0x13b   :  { %v613_v34 = vmul.f32 0.088388346, %v232_v32  ;;  %v637_v35 = vmul.f32 0.088388346, %v376_v33  ;;  %v234_v36 = vpop.f32.mrb[15].mxu0  ;;  %v378_v37 = vpop.f32.mrb[15].mxu1 }
 0x13c   :  { %v1457_v38 = vpack.c.bf16 %v234_v36, %v228_v28  ;;  %v1517_v39 = vpack.c.bf16 %v378_v37, %v372_v29 }
 0x13d   :  { %v1377_v40 = vpack.c.bf16 %v613_v34, %v612_v30  ;;  %v1437_v41 = vpack.c.bf16 %v637_v35, %v636_v31 }
 0x13e   :  { %1616 = vst [vmem:[#allocation8 + $0x18] sm:$0xff] %v1457_v38   ;;  %1628 = vst [vmem:[#allocation8 + $0x78] sm:$0xff] %v1517_v39   ;;  %v238_v42 = vpop.f32.mrb[16].mxu0  ;;  %v1726_v43 = vpop.f32.mrb[16].mxu1 }
 0x13f   :  { %1601 = vst [vmem:[#allocation7 + $0x18] sm:$0xff] %v1377_v40   ;;  %1613 = vst [vmem:[#allocation7 + $0x78] sm:$0xff] %v1437_v41   ;;  %v240_v44 = vpop.f32.mrb[17].mxu0  ;;  %v447_v45 = vpop.f32.mrb[17].mxu1  ;;  %v614_v49 = vmul.f32 0.088388346, %v238_v42 }
 0x140   :  { %v1522_v46 = vpack.c.bf16 %v1726_v43, %v447_v45 }
 0x142   :  { %1523 = vst [vmem:[#allocation10] sm:$0xff] %v1522_v46   ;;  %v244_v47 = vpop.f32.mrb[18].mxu0  ;;  %v1729_v48 = vpop.f32.mrb[18].mxu1 }
 0x143   :  { %v615_v50 = vmul.f32 0.088388346, %v244_v47  ;;  %v246_v51 = vpop.f32.mrb[19].mxu0  ;;  %v457_v52 = vpop.f32.mrb[19].mxu1 }
 0x144   :  { %v1462_v53 = vpack.c.bf16 %v246_v51, %v240_v44  ;;  %v1527_v54 = vpack.c.bf16 %v1729_v48, %v457_v52 }
 0x145   :  { %v1382_v55 = vpack.c.bf16 %v615_v50, %v614_v49 }
 0x146   :  { %1617 = vst [vmem:[#allocation8 + $0x20] sm:$0xff] %v1462_v53   ;;  %1629 = vst [vmem:[#allocation10 + $0x8] sm:$0xff] %v1527_v54   ;;  %v250_v0 = vpop.f32.mrb[20].mxu0  ;;  %v1732_v56 = vpop.f32.mrb[20].mxu1 }
 0x147   :  { %1602 = vst [vmem:[#allocation7 + $0x20] sm:$0xff] %v1382_v55   ;;  %v252_v57 = vpop.f32.mrb[21].mxu0  ;;  %v467_v58 = vpop.f32.mrb[21].mxu1  ;;  %v616_v62 = vmul.f32 0.088388346, %v250_v0 }
 0x148   :  { %v1532_v59 = vpack.c.bf16 %v1732_v56, %v467_v58 }
 0x14a   :  { %1630 = vst [vmem:[#allocation10 + $0x10] sm:$0xff] %v1532_v59   ;;  %v256_v60 = vpop.f32.mrb[22].mxu0  ;;  %v1735_v61 = vpop.f32.mrb[22].mxu1 }
 0x14b   :  { %v617_v63 = vmul.f32 0.088388346, %v256_v60  ;;  %v258_v1 = vpop.f32.mrb[23].mxu0  ;;  %v477_v2 = vpop.f32.mrb[23].mxu1 }
 0x14c   :  { %v1467_v3 = vpack.c.bf16 %v258_v1, %v252_v57  ;;  %v1537_v4 = vpack.c.bf16 %v1735_v61, %v477_v2 }
 0x14d   :  { %v1387_v5 = vpack.c.bf16 %v617_v63, %v616_v62 }
 0x14e   :  { %1618 = vst [vmem:[#allocation8 + $0x28] sm:$0xff] %v1467_v3   ;;  %1631 = vst [vmem:[#allocation10 + $0x18] sm:$0xff] %v1537_v4   ;;  %v262_v6 = vpop.f32.mrb[24].mxu0  ;;  %v1738_v7 = vpop.f32.mrb[24].mxu1 }
 0x14f   :  { %1603 = vst [vmem:[#allocation7 + $0x28] sm:$0xff] %v1387_v5   ;;  %v264_v8 = vpop.f32.mrb[25].mxu0  ;;  %v487_v9 = vpop.f32.mrb[25].mxu1  ;;  %v618_v13 = vmul.f32 0.088388346, %v262_v6 }
 0x150   :  { %v1542_v10 = vpack.c.bf16 %v1738_v7, %v487_v9 }
 0x152   :  { %1632 = vst [vmem:[#allocation10 + $0x20] sm:$0xff] %v1542_v10   ;;  %v268_v11 = vpop.f32.mrb[26].mxu0  ;;  %v1741_v12 = vpop.f32.mrb[26].mxu1 }
 0x153   :  { %v619_v14 = vmul.f32 0.088388346, %v268_v11  ;;  %v270_v15 = vpop.f32.mrb[27].mxu0  ;;  %v497_v16 = vpop.f32.mrb[27].mxu1 }
 0x154   :  { %v1472_v17 = vpack.c.bf16 %v270_v15, %v264_v8  ;;  %v1547_v18 = vpack.c.bf16 %v1741_v12, %v497_v16 }
 0x155   :  { %v1392_v19 = vpack.c.bf16 %v619_v14, %v618_v13 }
 0x156   :  { %1619 = vst [vmem:[#allocation8 + $0x30] sm:$0xff] %v1472_v17   ;;  %1633 = vst [vmem:[#allocation10 + $0x28] sm:$0xff] %v1547_v18   ;;  %v274_v20 = vpop.f32.mrb[28].mxu0  ;;  %v1744_v21 = vpop.f32.mrb[28].mxu1 }
 0x157   :  { %1604 = vst [vmem:[#allocation7 + $0x30] sm:$0xff] %v1392_v19   ;;  %v276_v22 = vpop.f32.mrb[29].mxu0  ;;  %v507_v23 = vpop.f32.mrb[29].mxu1  ;;  %v620_v27 = vmul.f32 0.088388346, %v274_v20 }
 0x158   :  { %v1552_v24 = vpack.c.bf16 %v1744_v21, %v507_v23 }
 0x15a   :  { %1634 = vst [vmem:[#allocation10 + $0x30] sm:$0xff] %v1552_v24   ;;  %v280_v25 = vpop.f32.mrb[30].mxu0  ;;  %v1747_v26 = vpop.f32.mrb[30].mxu1 }
 0x15b   :  { %v621_v28 = vmul.f32 0.088388346, %v280_v25  ;;  %v282_v29 = vpop.f32.mrb[31].mxu0  ;;  %v517_v30 = vpop.f32.mrb[31].mxu1 }
 0x15c   :  { %v1477_v31 = vpack.c.bf16 %v282_v29, %v276_v22  ;;  %v1557_v32 = vpack.c.bf16 %v1747_v26, %v517_v30 }
 0x15d   :  { %v1397_v33 = vpack.c.bf16 %v621_v28, %v620_v27 }
 0x15e   :  { %1620 = vst [vmem:[#allocation8 + $0x38] sm:$0xff] %v1477_v31   ;;  %1635 = vst [vmem:[#allocation10 + $0x38] sm:$0xff] %v1557_v32   ;;  %v286_v34 = vpop.f32.mrb[32].mxu0  ;;  %v1750_v35 = vpop.f32.mrb[32].mxu1 }
 0x15f   :  { %1605 = vst [vmem:[#allocation7 + $0x38] sm:$0xff] %v1397_v33   ;;  %v288_v36 = vpop.f32.mrb[33].mxu0  ;;  %v527_v37 = vpop.f32.mrb[33].mxu1  ;;  %v622_v41 = vmul.f32 0.088388346, %v286_v34 }
 0x160   :  { %v1562_v38 = vpack.c.bf16 %v1750_v35, %v527_v37 }
 0x162   :  { %1636 = vst [vmem:[#allocation10 + $0x40] sm:$0xff] %v1562_v38   ;;  %v292_v39 = vpop.f32.mrb[34].mxu0  ;;  %v1753_v40 = vpop.f32.mrb[34].mxu1 }
 0x163   :  { %v623_v42 = vmul.f32 0.088388346, %v292_v39  ;;  %v294_v43 = vpop.f32.mrb[35].mxu0  ;;  %v537_v44 = vpop.f32.mrb[35].mxu1 }
 0x164   :  { %v1482_v45 = vpack.c.bf16 %v294_v43, %v288_v36  ;;  %v1567_v46 = vpack.c.bf16 %v1753_v40, %v537_v44 }
 0x165   :  { %v1402_v47 = vpack.c.bf16 %v623_v42, %v622_v41 }
 0x166   :  { %1621 = vst [vmem:[#allocation8 + $0x40] sm:$0xff] %v1482_v45   ;;  %1637 = vst [vmem:[#allocation10 + $0x48] sm:$0xff] %v1567_v46   ;;  %v298_v48 = vpop.f32.mrb[36].mxu0  ;;  %v1756_v49 = vpop.f32.mrb[36].mxu1 }
 0x167   :  { %1606 = vst [vmem:[#allocation7 + $0x40] sm:$0xff] %v1402_v47   ;;  %v300_v50 = vpop.f32.mrb[37].mxu0  ;;  %v547_v51 = vpop.f32.mrb[37].mxu1  ;;  %v624_v55 = vmul.f32 0.088388346, %v298_v48 }
 0x168   :  { %v1572_v52 = vpack.c.bf16 %v1756_v49, %v547_v51 }
 0x16a   :  { %1638 = vst [vmem:[#allocation10 + $0x50] sm:$0xff] %v1572_v52   ;;  %v304_v53 = vpop.f32.mrb[38].mxu0  ;;  %v1759_v54 = vpop.f32.mrb[38].mxu1 }
 0x16b   :  { %v625_v0 = vmul.f32 0.088388346, %v304_v53  ;;  %v306_v56 = vpop.f32.mrb[39].mxu0  ;;  %v557_v57 = vpop.f32.mrb[39].mxu1 }
 0x16c   :  { %v1487_v58 = vpack.c.bf16 %v306_v56, %v300_v50  ;;  %v1577_v59 = vpack.c.bf16 %v1759_v54, %v557_v57 }
 0x16d   :  { %v1407_v60 = vpack.c.bf16 %v625_v0, %v624_v55 }
 0x16e   :  { %1622 = vst [vmem:[#allocation8 + $0x48] sm:$0xff] %v1487_v58   ;;  %1639 = vst [vmem:[#allocation10 + $0x58] sm:$0xff] %v1577_v59   ;;  %v310_v61 = vpop.f32.mrb[40].mxu0  ;;  %v1762_v62 = vpop.f32.mrb[40].mxu1 }
 0x16f   :  { %1607 = vst [vmem:[#allocation7 + $0x48] sm:$0xff] %v1407_v60   ;;  %v312_v63 = vpop.f32.mrb[41].mxu0  ;;  %v567_v1 = vpop.f32.mrb[41].mxu1  ;;  %v626_v5 = vmul.f32 0.088388346, %v310_v61 }
 0x170   :  { %v1582_v2 = vpack.c.bf16 %v1762_v62, %v567_v1 }
 0x172   :  { %1640 = vst [vmem:[#allocation10 + $0x60] sm:$0xff] %v1582_v2   ;;  %v316_v3 = vpop.f32.mrb[42].mxu0  ;;  %v1765_v4 = vpop.f32.mrb[42].mxu1 }
 0x173   :  { %v627_v6 = vmul.f32 0.088388346, %v316_v3  ;;  %v318_v7 = vpop.f32.mrb[43].mxu0  ;;  %v577_v8 = vpop.f32.mrb[43].mxu1 }
 0x174   :  { %v1492_v9 = vpack.c.bf16 %v318_v7, %v312_v63  ;;  %v1587_v10 = vpack.c.bf16 %v1765_v4, %v577_v8 }
 0x175   :  { %v1412_v11 = vpack.c.bf16 %v627_v6, %v626_v5 }
 0x176   :  { %1623 = vst [vmem:[#allocation8 + $0x50] sm:$0xff] %v1492_v9   ;;  %1641 = vst [vmem:[#allocation10 + $0x68] sm:$0xff] %v1587_v10   ;;  %v322_v12 = vpop.f32.mrb[44].mxu0  ;;  %v1768_v13 = vpop.f32.mrb[44].mxu1 }
 0x177   :  { %1608 = vst [vmem:[#allocation7 + $0x50] sm:$0xff] %v1412_v11   ;;  %v324_v14 = vpop.f32.mrb[45].mxu0  ;;  %v587_v15 = vpop.f32.mrb[45].mxu1  ;;  %v628_v19 = vmul.f32 0.088388346, %v322_v12 }
 0x178   :  { %v1592_v16 = vpack.c.bf16 %v1768_v13, %v587_v15 }
 0x17a   :  { %1642 = vst [vmem:[#allocation10 + $0x70] sm:$0xff] %v1592_v16   ;;  %v328_v17 = vpop.f32.mrb[46].mxu0  ;;  %v1771_v18 = vpop.f32.mrb[46].mxu1 }
 0x17b   :  { %v629_v20 = vmul.f32 0.088388346, %v328_v17  ;;  %v330_v21 = vpop.f32.mrb[47].mxu0  ;;  %v597_v22 = vpop.f32.mrb[47].mxu1 }
 0x17c   :  { %v1497_v23 = vpack.c.bf16 %v330_v21, %v324_v14  ;;  %v1597_v24 = vpack.c.bf16 %v1771_v18, %v597_v22 }
 0x17d   :  { %v1417_v25 = vpack.c.bf16 %v629_v20, %v628_v19 }
 0x17e   :  { %1624 = vst [vmem:[#allocation8 + $0x58] sm:$0xff] %v1497_v23   ;;  %1643 = vst [vmem:[#allocation10 + $0x78] sm:$0xff] %v1597_v24  }
 0x17f   :  { %1609 = vst [vmem:[#allocation7 + $0x58] sm:$0xff] %v1417_v25  }
 0x180   :  { %1919 = shalt.err (!%p1916_p6)
}
 0x181   :  { %s1920_s24 = scalar_lea.hbm %s2181_s3, 2048 }
 0x182   :  { %p1921_p7 = scmp.ne.s32.totalorder %s2181_s3, %s1920_s24  ;;  %p1924_p8 = scmp.lt.u32.totalorder %s1920_s24, %s2181_s3 }
 0x184   :  { %p1926_p9 = pnand %p1924_p8, %p1921_p7 }
 0x186   :  { %1929 = shalt.err (!%p1926_p9)
}
 0x187   :  { %s1992_s29 = smov 64   ;;  %s1993_s30 = smov 4  }
 0x188   :  { %1141 = dma.vmem_to_hbm [thread:$0]  %s1136_s16, 2048, %s2181_s3, [#allocation9], %s1992_s29, %s1992_s29, %s1993_s30  }
 0x189   :  { %s1930_s7 = scalar_lea.vmem %s2119_s18, 2048  ;;  %p1935_p11 = scmp.lt.s32.totalorder %s2119_s18, %s2119_s18 }
 0x18a   :  { %p1931_p10 = scmp.ne.s32.totalorder %s2119_s18, %s1930_s7  ;;  %p1936_p12 = scmp.lt.s32.totalorder %s1930_s7, %s1930_s7 }
 0x18c   :  { %p1937_p13 = por %p1936_p12, %p1935_p11 }
 0x18e   :  { %p1938_p0 = pnand %p1937_p13, %p1931_p10 }
 0x190   :  { %1941 = shalt.err (!%p1938_p0)
}
 0x191   :  { %s1942_s10 = scalar_lea.hbm %s2180_s2, 2048 }
 0x192   :  { %p1943_p1 = scmp.ne.s32.totalorder %s2180_s2, %s1942_s10  ;;  %p1946_p2 = scmp.lt.u32.totalorder %s1942_s10, %s2180_s2 }
 0x194   :  { %p1948_p3 = pnand %p1946_p2, %p1943_p1 }
 0x196   :  { %1951 = shalt.err (!%p1948_p3)
}
 0x197   :  { %1129 = dma.vmem_to_hbm [thread:$0]  %s2119_s18, 2048, %s2180_s2, [#allocation4], %s1992_s29, %s1992_s29, %s1993_s30  }
 0x198   :  { %s1952_s15 = scalar_lea.vmem %s2121_s20, 2048  ;;  %p1957_p5 = scmp.lt.s32.totalorder %s2121_s20, %s2121_s20 }
 0x199   :  { %p1953_p4 = scmp.ne.s32.totalorder %s2121_s20, %s1952_s15  ;;  %p1958_p6 = scmp.lt.s32.totalorder %s1952_s15, %s1952_s15 }
 0x19b   :  { %p1959_p7 = por %p1958_p6, %p1957_p5 }
 0x19d   :  { %p1960_p8 = pnand %p1959_p7, %p1953_p4 }
 0x19f   :  { %1963 = shalt.err (!%p1960_p8)
}
 0x1a0   :  { %s1964_s17 = scalar_lea.hbm %s2182_s4, 2048 }
 0x1a1   :  { %p1965_p9 = scmp.ne.s32.totalorder %s2182_s4, %s1964_s17  ;;  %p1968_p10 = scmp.lt.u32.totalorder %s1964_s17, %s2182_s4 }
 0x1a3   :  { %p1970_p11 = pnand %p1968_p10, %p1965_p9 }
 0x1a5   :  { %1973 = shalt.err (!%p1970_p11)
}
 0x1a6   :  { %1153 = dma.vmem_to_hbm [thread:$0]  %s2121_s20, 2048, %s2182_s4, [#allocation9], %s1992_s29, %s1992_s29, %s1993_s30  }
 0x1a7   :  { %1978 = dma.done.wait [#allocation4], 2048  }
 0x1a8   :  { %1979 = vsyncadd [#allocation4], 4294965248 }
 0x1a9   :  { %1980 = dma.done.wait [#allocation9], 4096  }
 0x1aa   :  { %1981 = vsyncadd [#allocation9], 4294963200 }
 0x1ab   :  { %1163 = vsyncpa [#allocation3], 1 }
 0x1ac   :  { %1164 = vsyncpa [#allocation6], 1 }
 0x1ad   :  { %1165 = vsyncpa [#allocation4], 1 }
 0x1ae   :  { %1166 = vsyncpa [#allocation9], 1 }

</bundles_post_ra>
